<compile_context>
chip_gen: v5e
topology: v5e:2x2
jax: 0.10.0
libtpu: 0.0.40
codegen_flags: <defaults>
</compile_context>

<pallas_src>
import functools
import math

import jax
import jax.numpy as jnp
from jax import lax
from jax.experimental import pallas as pl
from jax.experimental.pallas import tpu as pltpu

COMPUTE_DTYPE = jnp.bfloat16      # MXU operand dtype (accumulation is always f32)
LANE = 128                        # lane width / lane-dense conv output width
HALF_LOG_2PI = 0.5 * math.log(2.0 * math.pi)


def _round_up(x, m):
    return ((x + m - 1) // m) * m


def _pick_tile_m(M, max_tile=512):
    """Row-tile size.  Tiny M -> one full-extent block (always legal).
    Otherwise a multiple of 16 chosen so the grid has >=2 steps (both v7x
    TensorCores engage); large M -> 512-row blocks (~85% of HBM roofline)."""
    if M <= 16:
        return M
    if M <= 2 * max_tile:
        return _round_up(pl.cdiv(M, 2), 16)
    return max_tile


def _full_spec(shape):
    """BlockSpec covering the whole (small) array, resident across the grid."""
    return pl.BlockSpec(shape, lambda i, _n=len(shape): (0,) * _n)


# -----------------------------------------------------------------------------
# Kernel 1: fused matmul + bias + ReLU, row-tiled, lane-dense N (conv1 / conv2).
# -----------------------------------------------------------------------------
def _linear_kernel(x_ref, w_ref, b_ref, o_ref, *, relu):
    y = jnp.dot(x_ref[...], w_ref[...], preferred_element_type=jnp.float32)
    y = y + b_ref[...]
    if relu:
        y = jnp.maximum(y, 0.0)
    o_ref[...] = y.astype(o_ref.dtype)


def pallas_linear(x, w, b, *, relu, out_dtype):
    """y = x @ w + b (+ReLU).  x:[M,K], w:[K,N], b:[1,N] -> [M,N].
    No host-side pad / slice: ragged last row blocks are handled by Pallas
    (garbage rows only produce garbage rows that are never stored)."""
    M, K = x.shape
    N = w.shape[1]
    tm = _pick_tile_m(M)
    return pl.pallas_call(
        functools.partial(_linear_kernel, relu=relu),
        out_shape=jax.ShapeDtypeStruct((M, N), out_dtype),
        grid=(pl.cdiv(M, tm),),
        in_specs=[
            pl.BlockSpec((tm, K), lambda i: (i, 0)),
            _full_spec((K, N)),
            _full_spec((1, N)),
        ],
        out_specs=pl.BlockSpec((tm, N), lambda i: (i, 0)),
        compiler_params=pltpu.CompilerParams(dimension_semantics=("parallel",)),
    )(x, w, b)


# -----------------------------------------------------------------------------
# Conv layer: channel-last patch extraction (XLA glue) + fused Pallas matmul.
# -----------------------------------------------------------------------------
def conv_layer(x, w_mat, b, *, kh, kw, stride, c_out):
    """x: [B,H,W,Cin] channel-last, TRUE Cin (no padding).
    w_mat: [Cin*kh*kw, 128]; b: [1,128].  The 128-wide store stays lane-dense;
    the result is sliced back to c_out channels so padded lanes never leak
    into the next contraction dim."""
    # TODO(synk): in-kernel strided gather instead of XLA-side im2col.
    patches = lax.conv_general_dilated_patches(
        x, (kh, kw), (stride, stride), "VALID",
        dimension_numbers=("NHWC", "HWIO", "NHWC"))      # feature order (c, kh, kw)
    B, OH, OW, K = patches.shape
    y = pallas_linear(patches.reshape(B * OH * OW, K), w_mat, b,
                      relu=True, out_dtype=COMPUTE_DTYPE)
    return y.reshape(B, OH, OW, LANE)[..., :c_out]


# -----------------------------------------------------------------------------
# Kernel 2: fused conv3 + fc1 + fc2 + actor head + critic head (one pallas_call).
# -----------------------------------------------------------------------------
def _fused_heads_kernel(x_ref, eps_ref, c3w_ref, c3b_ref, fc1w_ref, fc1b_ref,
                        fc2w_ref, fc2b_ref, wh_ref, bh_ref, wo_ref, bo_ref,
                        std_ref, lpb_ref, o_ref, *, n_actions, s3, k3):
    A = n_actions
    cdt = c3w_ref.dtype

    # ---- conv3 (per output pixel) fused with the fc1 accumulation ----
    # x_ref row = concat over conv3 output pixels s of that pixel's patch [k3].
    acc = jnp.zeros((x_ref.shape[0], fc1b_ref.shape[1]), jnp.float32)
    for s in range(s3):                                   # static unroll, s3 small
        p = x_ref[:, s * k3:(s + 1) * k3]                 # [tm, k3]
        c3 = jnp.dot(p, c3w_ref[...], preferred_element_type=jnp.float32) + c3b_ref[...]
        c3 = jnp.maximum(c3, 0.0).astype(cdt)             # [tm, 64]
        acc = acc + jnp.dot(c3, fc1w_ref[s], preferred_element_type=jnp.float32)
    h = jnp.maximum(acc + fc1b_ref[...], 0.0).astype(cdt)

    # ---- fc2: Linear(64,64) + ReLU ----
    h = jnp.dot(h, fc2w_ref[...], preferred_element_type=jnp.float32) + fc2b_ref[...]
    h = jnp.maximum(h, 0.0).astype(cdt)

    # ---- actor & critic hidden layers, column-packed into one [64,128] matmul ----
    h = jnp.dot(h, wh_ref[...], preferred_element_type=jnp.float32) + bh_ref[...]
    h = jnp.maximum(h, 0.0).astype(cdt)                   # cols 0:64 actor, 64:128 critic

    # ---- mean (cols 0:A) and value (col A+1), packed into one [128,128] matmul ----
    raw = jnp.dot(h, wo_ref[...], preferred_element_type=jnp.float32) + bo_ref[...]

    eps = eps_ref[...]                                    # [tm,128] f32, zeros beyond col A
    act_val = raw + std_ref[...] * eps                    # [action | 0 | value | 0...]
    lp = lpb_ref[...] - 0.5 * (eps * eps)                 # zeros beyond col A
    logp = jnp.sum(lp, axis=-1, keepdims=True)            # [tm, 1]
    col = lax.broadcasted_iota(jnp.int32, raw.shape, 1)
    o_ref[...] = act_val + jnp.where(col == A, logp, 0.0)


def pallas_fc_heads(patches3, eps, kp, *, n_actions, s3, k3):
    B = patches3.shape[0]
    A = n_actions
    assert A + 2 <= LANE
    eps_pad = jnp.zeros((B, LANE), jnp.float32).at[:, :A].set(eps.astype(jnp.float32))
    tm = _pick_tile_m(B)

    out = pl.pallas_call(
        functools.partial(_fused_heads_kernel, n_actions=A, s3=s3, k3=k3),
        out_shape=jax.ShapeDtypeStruct((B, LANE), jnp.float32),
        grid=(pl.cdiv(B, tm),),
        in_specs=[
            pl.BlockSpec((tm, s3 * k3), lambda i: (i, 0)),
            pl.BlockSpec((tm, LANE), lambda i: (i, 0)),
            _full_spec(kp["conv3_w"].shape),
            _full_spec(kp["conv3_b"].shape),
            _full_spec(kp["fc1_w"].shape),
            _full_spec(kp["fc1_b"].shape),
            _full_spec(kp["fc2_w"].shape),
            _full_spec(kp["fc2_b"].shape),
            _full_spec(kp["wh"].shape),
            _full_spec(kp["bh"].shape),
            _full_spec(kp["wo"].shape),
            _full_spec(kp["bo"].shape),
            _full_spec(kp["std"].shape),
            _full_spec(kp["lp_bias"].shape),
        ],
        out_specs=pl.BlockSpec((tm, LANE), lambda i: (i, 0)),
        compiler_params=pltpu.CompilerParams(dimension_semantics=("parallel",)),
    )(patches3, eps_pad, kp["conv3_w"], kp["conv3_b"], kp["fc1_w"], kp["fc1_b"],
      kp["fc2_w"], kp["fc2_b"], kp["wh"], kp["bh"], kp["wo"], kp["bo"],
      kp["std"], kp["lp_bias"])

    action = out[:, :A]
    log_prob = out[:, A]
    value = out[:, A + 1]
    return action, log_prob, value


# -----------------------------------------------------------------------------
# Parameter init (PyTorch layout) and packing into Pallas-ready tensors.
# -----------------------------------------------------------------------------
def _uniform(key, shape, fan_in):
    bound = 1.0 / math.sqrt(fan_in)
    return jax.random.uniform(key, shape, jnp.float32, -bound, bound)


def init_params(key, in_channels, conv_out, n_actions):
    """PyTorch-layout params: conv [O,C,KH,KW]; linear weight [out,in], bias [out]."""
    ks = jax.random.split(key, 18)
    p = {}
    p["conv1_w"] = _uniform(ks[0], (32, in_channels, 8, 8), in_channels * 64)
    p["conv1_b"] = _uniform(ks[1], (32,), in_channels * 64)
    p["conv2_w"] = _uniform(ks[2], (64, 32, 4, 4), 32 * 16)
    p["conv2_b"] = _uniform(ks[3], (64,), 32 * 16)
    p["conv3_w"] = _uniform(ks[4], (64, 64, 3, 3), 64 * 9)
    p["conv3_b"] = _uniform(ks[5], (64,), 64 * 9)
    p["fc1_w"] = _uniform(ks[6], (64, conv_out), conv_out)
    p["fc1_b"] = _uniform(ks[7], (64,), conv_out)
    p["fc2_w"] = _uniform(ks[8], (64, 64), 64)
    p["fc2_b"] = _uniform(ks[9], (64,), 64)
    p["actor_fc_w"] = _uniform(ks[10], (64, 64), 64)
    p["actor_fc_b"] = _uniform(ks[11], (64,), 64)
    p["fc_mean_w"] = _uniform(ks[12], (n_actions, 64), 64)
    p["fc_mean_b"] = _uniform(ks[13], (n_actions,), 64)
    p["b_logstd"] = jnp.zeros((1, n_actions), jnp.float32)
    p["critic_fc_w"] = _uniform(ks[14], (64, 64), 64)
    p["critic_fc_b"] = _uniform(ks[15], (64,), 64)
    p["critic_out_w"] = _uniform(ks[16], (1, 64), 64)
    p["critic_out_b"] = _uniform(ks[17], (1,), 64)
    return p


def pack_params(p, *, n_actions, conv_oh, conv_ow):
    """Permute / pad / pack PyTorch-layout params into Pallas kernel tensors."""
    cd = COMPUTE_DTYPE
    A = n_actions
    S3 = conv_oh * conv_ow

    def conv_mat(w, n_pad):
        # [O,C,KH,KW] -> [C*KH*KW, n_pad]; row order (c,kh,kw) matches both
        # torch weight.reshape(O, C*KH*KW) and lax patch extraction.
        # The CONTRACTION dim keeps the true cin (no zero-channel inflation).
        O, C, KH, KW = w.shape
        w = jnp.pad(w, ((0, n_pad - O), (0, 0), (0, 0), (0, 0)))
        return w.reshape(n_pad, C * KH * KW).T.astype(cd)

    def bias_row(b, n_pad):
        return jnp.pad(b, (0, n_pad - b.shape[0])).reshape(1, n_pad).astype(jnp.float32)

    kp = {}
    # conv1 / conv2: lane-dense 128-wide output stores (sliced back afterwards).
    kp["conv1_w"] = conv_mat(p["conv1_w"], LANE)
    kp["conv1_b"] = bias_row(p["conv1_b"], LANE)
    kp["conv2_w"] = conv_mat(p["conv2_w"], LANE)
    kp["conv2_b"] = bias_row(p["conv2_b"], LANE)
    # conv3 lives inside the fused heads kernel -> keep its true 64 outputs.
    kp["conv3_w"] = conv_mat(p["conv3_w"], 64)
    kp["conv3_b"] = bias_row(p["conv3_b"], 64)

    # fc1: torch flatten order is (c, oh, ow); repack as [S3, 64_cin, 64_out]
    # so the fused kernel consumes conv3's per-pixel 64-channel vectors directly.
    W = p["fc1_w"].reshape(64, 64, S3)                       # (out, c, s)
    kp["fc1_w"] = jnp.transpose(W, (2, 1, 0)).astype(cd)     # (s, c, out)
    kp["fc1_b"] = p["fc1_b"].reshape(1, 64).astype(jnp.float32)
    kp["fc2_w"] = p["fc2_w"].T.astype(cd)
    kp["fc2_b"] = p["fc2_b"].reshape(1, 64).astype(jnp.float32)

    # actor/critic hidden layers column-packed into one [64, 128] matrix.
    kp["wh"] = jnp.concatenate([p["actor_fc_w"].T, p["critic_fc_w"].T], axis=1).astype(cd)
    kp["bh"] = jnp.concatenate([p["actor_fc_b"], p["critic_fc_b"]]).reshape(1, LANE).astype(jnp.float32)

    # output layers packed into one [128, 128] matmul:
    #   rows 0:64  (actor hidden)  -> cols 0:A  = mean
    #   rows 64:128 (critic hidden)-> col  A+1  = value
    wo = jnp.zeros((LANE, LANE), jnp.float32)
    wo = wo.at[0:64, 0:A].set(p["fc_mean_w"].T)
    wo = wo.at[64:LANE, A + 1:A + 2].set(p["critic_out_w"].T)
    bo = jnp.zeros((1, LANE), jnp.float32)
    bo = bo.at[0, 0:A].set(p["fc_mean_b"])
    bo = bo.at[0, A + 1].set(p["critic_out_b"][0])
    kp["wo"] = wo.astype(cd)
    kp["bo"] = bo

    # Gaussian constants precomputed host-side (no in-kernel exp / subtract).
    logstd = p["b_logstd"][0]
    kp["std"] = jnp.zeros((1, LANE), jnp.float32).at[0, 0:A].set(jnp.exp(logstd))
    kp["lp_bias"] = jnp.zeros((1, LANE), jnp.float32).at[0, 0:A].set(-logstd - HALF_LOG_2PI)
    return kp


# -----------------------------------------------------------------------------
# Forward pass (matches ActorCritic.forward semantics)
# -----------------------------------------------------------------------------
def actor_critic_forward(kp, state, eps, *, n_actions, deterministic=False):
    """state: [B, C, H, W] NCHW.  Returns (action[B,A], log_prob[B], value[B])."""
    x = jnp.transpose(state, (0, 2, 3, 1)).astype(COMPUTE_DTYPE)   # -> NHWC, once
    x = conv_layer(x, kp["conv1_w"], kp["conv1_b"], kh=8, kw=8, stride=4, c_out=32)
    x = conv_layer(x, kp["conv2_w"], kp["conv2_b"], kh=4, kw=4, stride=2, c_out=64)
    # conv3 is fused into the FC/heads kernel: only extract its patch matrix here.
    patches3 = lax.conv_general_dilated_patches(
        x, (3, 3), (1, 1), "VALID", dimension_numbers=("NHWC", "HWIO", "NHWC"))
    B, oh3, ow3, k3 = patches3.shape
    patches3 = patches3.reshape(B, oh3 * ow3 * k3)
    if deterministic:
        eps = jnp.zeros_like(eps)     # action = dist.mean (log_prob of the mean)
    return pallas_fc_heads(patches3, eps, kp, n_actions=n_actions,
                           s3=oh3 * ow3, k3=k3)


# -----------------------------------------------------------------------------
# Pure-JAX f32 reference (mirrors the PyTorch module) for numeric validation.
# -----------------------------------------------------------------------------
def reference_forward(p, state, eps):
    def conv(x, w, b, stride):
        y = lax.conv_general_dilated(x, w, (stride, stride), "VALID",
                                     dimension_numbers=("NCHW", "OIHW", "NCHW"))
        return jnp.maximum(y + b.reshape(1, -1, 1, 1), 0.0)
    x = conv(state, p["conv1_w"], p["conv1_b"], 4)
    x = conv(x, p["conv2_w"], p["conv2_b"], 2)
    x = conv(x, p["conv3_w"], p["conv3_b"], 1)
    x = x.reshape(x.shape[0], -1)                      # NCHW flatten (c, oh, ow)
    x = jnp.maximum(x @ p["fc1_w"].T + p["fc1_b"], 0.0)
    x = jnp.maximum(x @ p["fc2_w"].T + p["fc2_b"], 0.0)
    ah = jnp.maximum(x @ p["actor_fc_w"].T + p["actor_fc_b"], 0.0)
    mean = ah @ p["fc_mean_w"].T + p["fc_mean_b"]
    logstd = jnp.zeros_like(mean) + p["b_logstd"]
    action = mean + jnp.exp(logstd) * eps
    logp = jnp.sum(-0.5 * eps * eps - logstd - HALF_LOG_2PI, axis=-1)
    ch = jnp.maximum(x @ p["critic_fc_w"].T + p["critic_fc_b"], 0.0)
    value = (ch @ p["critic_out_w"].T + p["critic_out_b"])[:, 0]
    return action, logp, value


# -----------------------------------------------------------------------------
if __name__ == "__main__":
    key = jax.random.PRNGKey(0)
    k_param, k_state, k_eps = jax.random.split(key, 3)

    batch = 2
    in_channels = 4
    spatial = 36          # 36 -> conv stack -> 1x1 spatial
    n_actions = 4

    def _co(h, k, s):
        return (h - k) // s + 1

    oh = _co(_co(_co(spatial, 8, 4), 4, 2), 3, 1)
    conv_out = 64 * oh * oh          # PyTorch conv_out (NCHW flatten)

    params = init_params(k_param, in_channels, conv_out, n_actions)
    kp = pack_params(params, n_actions=n_actions, conv_oh=oh, conv_ow=oh)

    state = jax.random.normal(k_state, (batch, in_channels, spatial, spatial), jnp.float32)
    eps = jax.random.normal(k_eps, (batch, n_actions), jnp.float32)   # dist.sample() noise

    fwd = jax.jit(functools.partial(actor_critic_forward,
                                    n_actions=n_actions, deterministic=False))
    action, log_prob, value = fwd(kp, state, eps)
    jax.block_until_ready((action, log_prob, value))

    assert action.shape == (batch, n_actions)
    assert log_prob.shape == (batch,)
    assert value.shape == (batch,)

    # Numeric check vs pure-JAX f32 reference (bf16 matmul operands -> ~1e-2 tol).
    ref_a, ref_lp, ref_v = reference_forward(params, state, eps)
    assert jnp.allclose(action, ref_a, atol=5e-2, rtol=5e-2)
    assert jnp.allclose(log_prob, ref_lp, atol=5e-2, rtol=5e-2)
    assert jnp.allclose(value, ref_v, atol=5e-2, rtol=5e-2)

    print("KERNEL_OK")
</pallas_src>

<mosaic_0001>
module attributes {stable_mosaic.version = 11 : i64} {
  func.func @_linear_kernel(%arg0: i32, %arg1: memref<64x256xbf16, #tpu.memory_space<vmem>>, %arg2: memref<256x128xbf16, #tpu.memory_space<vmem>>, %arg3: memref<1x128xf32, #tpu.memory_space<vmem>>, %arg4: memref<64x128xbf16, #tpu.memory_space<vmem>>) attributes {dimension_semantics = [#tpu.dimension_semantics<parallel>], iteration_bounds = array<i64: 2>, scalar_prefetch = 0 : i64, scratch_operands = 0 : i64, tpu.core_type = #tpu.core_type<tc>, window_params = [{transform_indices = @transform_0, window_bounds = array<i64: 64, 256>}, {pipeline_mode = #tpu.pipeline_mode<synchronous>, transform_indices = @transform_1, window_bounds = array<i64: 256, 128>}, {pipeline_mode = #tpu.pipeline_mode<synchronous>, transform_indices = @transform_2, window_bounds = array<i64: 1, 128>}, {transform_indices = @transform_3, window_bounds = array<i64: 64, 128>}]} {
    %c0 = arith.constant 0 : index
    %c0_0 = arith.constant 0 : index
    %0 = vector.load %arg1[%c0, %c0_0] : memref<64x256xbf16, #tpu.memory_space<vmem>>, vector<64x256xbf16>
    %c0_1 = arith.constant 0 : index
    %c0_2 = arith.constant 0 : index
    %1 = vector.load %arg2[%c0_1, %c0_2] : memref<256x128xbf16, #tpu.memory_space<vmem>>, vector<256x128xbf16>
    %cst = arith.constant dense<0.000000e+00> : vector<64x128xf32>
    %2 = tpu.matmul %0, %1, %cst {dimension_numbers = #tpu.dot_dimension_numbers<[1], [0], [0], [1], [0, 0, 1, 1], [], []>} : vector<64x256xbf16>, vector<256x128xbf16>, vector<64x128xf32> -> vector<64x128xf32>
    %c0_3 = arith.constant 0 : index
    %c0_4 = arith.constant 0 : index
    %3 = vector.load %arg3[%c0_3, %c0_4] : memref<1x128xf32, #tpu.memory_space<vmem>>, vector<1x128xf32>
    %4 = vector.broadcast %3 : vector<1x128xf32> to vector<64x128xf32>
    %5 = arith.addf %2, %4 : vector<64x128xf32>
    %cst_5 = arith.constant 0.000000e+00 : f32
    %6 = vector.broadcast %cst_5 : f32 to vector<64x128xf32>
    %7 = arith.maximumf %5, %6 : vector<64x128xf32>
    %8 = arith.truncf %7 : vector<64x128xf32> to vector<64x128xbf16>
    %c0_6 = arith.constant 0 : index
    %c0_7 = arith.constant 0 : index
    %9 = vector.load %arg4[%c0_6, %c0_7] : memref<64x128xbf16, #tpu.memory_space<vmem>>, vector<64x128xbf16>
    tpu.vector_store %arg4[%c0_6, %c0_7], %8 {strides = array<i32>} : memref<64x128xbf16, #tpu.memory_space<vmem>>, vector<64x128xbf16>,
    return
  }
  func.func @transform_0(%arg0: i32) -> (i32, i32) {
    %c0_i32 = arith.constant 0 : i32
    %c0_i32_0 = arith.constant 0 : i32
    return %arg0, %c0_i32 : i32, i32
  }
  func.func @transform_1(%arg0: i32) -> (i32, i32) {
    %c0_i32 = arith.constant 0 : i32
    %c0_i32_0 = arith.constant 0 : i32
    %c0_i32_1 = arith.constant 0 : i32
    return %c0_i32, %c0_i32_0 : i32, i32
  }
  func.func @transform_2(%arg0: i32) -> (i32, i32) {
    %c0_i32 = arith.constant 0 : i32
    %c0_i32_0 = arith.constant 0 : i32
    %c0_i32_1 = arith.constant 0 : i32
    return %c0_i32, %c0_i32_0 : i32, i32
  }
  func.func @transform_3(%arg0: i32) -> (i32, i32) {
    %c0_i32 = arith.constant 0 : i32
    %c0_i32_0 = arith.constant 0 : i32
    return %arg0, %c0_i32 : i32, i32
  }
}

module attributes {stable_mosaic.version = 11 : i64} {
  func.func @_linear_kernel(%arg0: i32, %arg1: memref<16x512xbf16, #tpu.memory_space<vmem>>, %arg2: memref<512x128xbf16, #tpu.memory_space<vmem>>, %arg3: memref<1x128xf32, #tpu.memory_space<vmem>>, %arg4: memref<16x128xbf16, #tpu.memory_space<vmem>>) attributes {dimension_semantics = [#tpu.dimension_semantics<parallel>], iteration_bounds = array<i64: 2>, scalar_prefetch = 0 : i64, scratch_operands = 0 : i64, tpu.core_type = #tpu.core_type<tc>, window_params = [{transform_indices = @transform_0, window_bounds = array<i64: 16, 512>}, {pipeline_mode = #tpu.pipeline_mode<synchronous>, transform_indices = @transform_1, window_bounds = array<i64: 512, 128>}, {pipeline_mode = #tpu.pipeline_mode<synchronous>, transform_indices = @transform_2, window_bounds = array<i64: 1, 128>}, {transform_indices = @transform_3, window_bounds = array<i64: 16, 128>}]} {
    %c0 = arith.constant 0 : index
    %c0_0 = arith.constant 0 : index
    %0 = vector.load %arg1[%c0, %c0_0] : memref<16x512xbf16, #tpu.memory_space<vmem>>, vector<16x512xbf16>
    %c0_1 = arith.constant 0 : index
    %c0_2 = arith.constant 0 : index
    %1 = vector.load %arg2[%c0_1, %c0_2] : memref<512x128xbf16, #tpu.memory_space<vmem>>, vector<512x128xbf16>
    %cst = arith.constant dense<0.000000e+00> : vector<16x128xf32>
    %2 = tpu.matmul %0, %1, %cst {dimension_numbers = #tpu.dot_dimension_numbers<[1], [0], [0], [1], [0, 0, 1, 1], [], []>} : vector<16x512xbf16>, vector<512x128xbf16>, vector<16x128xf32> -> vector<16x128xf32>
    %c0_3 = arith.constant 0 : index
    %c0_4 = arith.constant 0 : index
    %3 = vector.load %arg3[%c0_3, %c0_4] : memref<1x128xf32, #tpu.memory_space<vmem>>, vector<1x128xf32>
    %4 = vector.broadcast %3 : vector<1x128xf32> to vector<16x128xf32>
    %5 = arith.addf %2, %4 : vector<16x128xf32>
    %cst_5 = arith.constant 0.000000e+00 : f32
    %6 = vector.broadcast %cst_5 : f32 to vector<16x128xf32>
    %7 = arith.maximumf %5, %6 : vector<16x128xf32>
    %8 = arith.truncf %7 : vector<16x128xf32> to vector<16x128xbf16>
    %c0_6 = arith.constant 0 : index
    %c0_7 = arith.constant 0 : index
    %9 = vector.load %arg4[%c0_6, %c0_7] : memref<16x128xbf16, #tpu.memory_space<vmem>>, vector<16x128xbf16>
    tpu.vector_store %arg4[%c0_6, %c0_7], %8 {strides = array<i32>} : memref<16x128xbf16, #tpu.memory_space<vmem>>, vector<16x128xbf16>,
    return
  }
  func.func @transform_0(%arg0: i32) -> (i32, i32) {
    %c0_i32 = arith.constant 0 : i32
    %c0_i32_0 = arith.constant 0 : i32
    return %arg0, %c0_i32 : i32, i32
  }
  func.func @transform_1(%arg0: i32) -> (i32, i32) {
    %c0_i32 = arith.constant 0 : i32
    %c0_i32_0 = arith.constant 0 : i32
    %c0_i32_1 = arith.constant 0 : i32
    return %c0_i32, %c0_i32_0 : i32, i32
  }
  func.func @transform_2(%arg0: i32) -> (i32, i32) {
    %c0_i32 = arith.constant 0 : i32
    %c0_i32_0 = arith.constant 0 : i32
    %c0_i32_1 = arith.constant 0 : i32
    return %c0_i32, %c0_i32_0 : i32, i32
  }
  func.func @transform_3(%arg0: i32) -> (i32, i32) {
    %c0_i32 = arith.constant 0 : i32
    %c0_i32_0 = arith.constant 0 : i32
    return %arg0, %c0_i32 : i32, i32
  }
}

module attributes {stable_mosaic.version = 11 : i64} {
  func.func @_fused_heads_kernel(%arg0: i32, %arg1: memref<2x576xbf16, #tpu.memory_space<vmem>>, %arg2: memref<2x128xf32, #tpu.memory_space<vmem>>, %arg3: memref<576x64xbf16, #tpu.memory_space<vmem>>, %arg4: memref<1x64xf32, #tpu.memory_space<vmem>>, %arg5: memref<1x64x64xbf16, #tpu.memory_space<vmem>>, %arg6: memref<1x64xf32, #tpu.memory_space<vmem>>, %arg7: memref<64x64xbf16, #tpu.memory_space<vmem>>, %arg8: memref<1x64xf32, #tpu.memory_space<vmem>>, %arg9: memref<64x128xbf16, #tpu.memory_space<vmem>>, %arg10: memref<1x128xf32, #tpu.memory_space<vmem>>, %arg11: memref<128x128xbf16, #tpu.memory_space<vmem>>, %arg12: memref<1x128xf32, #tpu.memory_space<vmem>>, %arg13: memref<1x128xf32, #tpu.memory_space<vmem>>, %arg14: memref<1x128xf32, #tpu.memory_space<vmem>>, %arg15: memref<2x128xf32, #tpu.memory_space<vmem>>) attributes {dimension_semantics = [#tpu.dimension_semantics<parallel>], iteration_bounds = array<i64: 1>, scalar_prefetch = 0 : i64, scratch_operands = 0 : i64, tpu.core_type = #tpu.core_type<tc>, window_params = [{transform_indices = @transform_0, window_bounds = array<i64: 2, 576>}, {transform_indices = @transform_1, window_bounds = array<i64: 2, 128>}, {pipeline_mode = #tpu.pipeline_mode<synchronous>, transform_indices = @transform_2, window_bounds = array<i64: 576, 64>}, {pipeline_mode = #tpu.pipeline_mode<synchronous>, transform_indices = @transform_3, window_bounds = array<i64: 1, 64>}, {pipeline_mode = #tpu.pipeline_mode<synchronous>, transform_indices = @transform_4, window_bounds = array<i64: 1, 64, 64>}, {pipeline_mode = #tpu.pipeline_mode<synchronous>, transform_indices = @transform_5, window_bounds = array<i64: 1, 64>}, {pipeline_mode = #tpu.pipeline_mode<synchronous>, transform_indices = @transform_6, window_bounds = array<i64: 64, 64>}, {pipeline_mode = #tpu.pipeline_mode<synchronous>, transform_indices = @transform_7, window_bounds = array<i64: 1, 64>}, {pipeline_mode = #tpu.pipeline_mode<synchronous>, transform_indices = @transform_8, window_bounds = array<i64: 64, 128>}, {pipeline_mode = #tpu.pipeline_mode<synchronous>, transform_indices = @transform_9, window_bounds = array<i64: 1, 128>}, {pipeline_mode = #tpu.pipeline_mode<synchronous>, transform_indices = @transform_10, window_bounds = array<i64: 128, 128>}, {pipeline_mode = #tpu.pipeline_mode<synchronous>, transform_indices = @transform_11, window_bounds = array<i64: 1, 128>}, {pipeline_mode = #tpu.pipeline_mode<synchronous>, transform_indices = @transform_12, window_bounds = array<i64: 1, 128>}, {pipeline_mode = #tpu.pipeline_mode<synchronous>, transform_indices = @transform_13, window_bounds = array<i64: 1, 128>}, {transform_indices = @transform_14, window_bounds = array<i64: 2, 128>}]} {
    %cst = arith.constant 0.000000e+00 : f32
    %0 = vector.broadcast %cst : f32 to vector<2x64xf32>
    %c0 = arith.constant 0 : index
    %c0_0 = arith.constant 0 : index
    %1 = vector.load %arg1[%c0, %c0_0] : memref<2x576xbf16, #tpu.memory_space<vmem>>, vector<2x576xbf16>
    %c0_1 = arith.constant 0 : index
    %c0_2 = arith.constant 0 : index
    %2 = vector.load %arg3[%c0_1, %c0_2] : memref<576x64xbf16, #tpu.memory_space<vmem>>, vector<576x64xbf16>
    %cst_3 = arith.constant dense<0.000000e+00> : vector<2x64xf32>
    %3 = tpu.matmul %1, %2, %cst_3 {dimension_numbers = #tpu.dot_dimension_numbers<[1], [0], [0], [1], [0, 0, 1, 1], [], []>} : vector<2x576xbf16>, vector<576x64xbf16>, vector<2x64xf32> -> vector<2x64xf32>
    %c0_4 = arith.constant 0 : index
    %c0_5 = arith.constant 0 : index
    %4 = vector.load %arg4[%c0_4, %c0_5] : memref<1x64xf32, #tpu.memory_space<vmem>>, vector<1x64xf32>
    %5 = vector.broadcast %4 : vector<1x64xf32> to vector<2x64xf32>
    %6 = arith.addf %3, %5 : vector<2x64xf32>
    %cst_6 = arith.constant 0.000000e+00 : f32
    %7 = vector.broadcast %cst_6 : f32 to vector<2x64xf32>
    %8 = arith.maximumf %6, %7 : vector<2x64xf32>
    %9 = arith.truncf %8 : vector<2x64xf32> to vector<2x64xbf16>
    %c0_7 = arith.constant 0 : index
    %c0_8 = arith.constant 0 : index
    %c0_9 = arith.constant 0 : index
    %10 = vector.load %arg5[%c0_7, %c0_8, %c0_9] : memref<1x64x64xbf16, #tpu.memory_space<vmem>>, vector<1x64x64xbf16>
    %11 = vector.shape_cast %10 : vector<1x64x64xbf16> to vector<64x64xbf16>
    %cst_10 = arith.constant dense<0.000000e+00> : vector<2x64xf32>
    %12 = tpu.matmul %9, %11, %cst_10 {dimension_numbers = #tpu.dot_dimension_numbers<[1], [0], [0], [1], [0, 0, 1, 1], [], []>} : vector<2x64xbf16>, vector<64x64xbf16>, vector<2x64xf32> -> vector<2x64xf32>
    %13 = arith.addf %0, %12 : vector<2x64xf32>
    %c0_11 = arith.constant 0 : index
    %c0_12 = arith.constant 0 : index
    %14 = vector.load %arg6[%c0_11, %c0_12] : memref<1x64xf32, #tpu.memory_space<vmem>>, vector<1x64xf32>
    %15 = vector.broadcast %14 : vector<1x64xf32> to vector<2x64xf32>
    %16 = arith.addf %13, %15 : vector<2x64xf32>
    %cst_13 = arith.constant 0.000000e+00 : f32
    %17 = vector.broadcast %cst_13 : f32 to vector<2x64xf32>
    %18 = arith.maximumf %16, %17 : vector<2x64xf32>
    %19 = arith.truncf %18 : vector<2x64xf32> to vector<2x64xbf16>
    %c0_14 = arith.constant 0 : index
    %c0_15 = arith.constant 0 : index
    %20 = vector.load %arg7[%c0_14, %c0_15] : memref<64x64xbf16, #tpu.memory_space<vmem>>, vector<64x64xbf16>
    %cst_16 = arith.constant dense<0.000000e+00> : vector<2x64xf32>
    %21 = tpu.matmul %19, %20, %cst_16 {dimension_numbers = #tpu.dot_dimension_numbers<[1], [0], [0], [1], [0, 0, 1, 1], [], []>} : vector<2x64xbf16>, vector<64x64xbf16>, vector<2x64xf32> -> vector<2x64xf32>
    %c0_17 = arith.constant 0 : index
    %c0_18 = arith.constant 0 : index
    %22 = vector.load %arg8[%c0_17, %c0_18] : memref<1x64xf32, #tpu.memory_space<vmem>>, vector<1x64xf32>
    %23 = vector.broadcast %22 : vector<1x64xf32> to vector<2x64xf32>
    %24 = arith.addf %21, %23 : vector<2x64xf32>
    %cst_19 = arith.constant 0.000000e+00 : f32
    %25 = vector.broadcast %cst_19 : f32 to vector<2x64xf32>
    %26 = arith.maximumf %24, %25 : vector<2x64xf32>
    %27 = arith.truncf %26 : vector<2x64xf32> to vector<2x64xbf16>
    %c0_20 = arith.constant 0 : index
    %c0_21 = arith.constant 0 : index
    %28 = vector.load %arg9[%c0_20, %c0_21] : memref<64x128xbf16, #tpu.memory_space<vmem>>, vector<64x128xbf16>
    %cst_22 = arith.constant dense<0.000000e+00> : vector<2x128xf32>
    %29 = tpu.matmul %27, %28, %cst_22 {dimension_numbers = #tpu.dot_dimension_numbers<[1], [0], [0], [1], [0, 0, 1, 1], [], []>} : vector<2x64xbf16>, vector<64x128xbf16>, vector<2x128xf32> -> vector<2x128xf32>
    %c0_23 = arith.constant 0 : index
    %c0_24 = arith.constant 0 : index
    %30 = vector.load %arg10[%c0_23, %c0_24] : memref<1x128xf32, #tpu.memory_space<vmem>>, vector<1x128xf32>
    %31 = vector.broadcast %30 : vector<1x128xf32> to vector<2x128xf32>
    %32 = arith.addf %29, %31 : vector<2x128xf32>
    %cst_25 = arith.constant 0.000000e+00 : f32
    %33 = vector.broadcast %cst_25 : f32 to vector<2x128xf32>
    %34 = arith.maximumf %32, %33 : vector<2x128xf32>
    %35 = arith.truncf %34 : vector<2x128xf32> to vector<2x128xbf16>
    %c0_26 = arith.constant 0 : index
    %c0_27 = arith.constant 0 : index
    %36 = vector.load %arg11[%c0_26, %c0_27] : memref<128x128xbf16, #tpu.memory_space<vmem>>, vector<128x128xbf16>
    %cst_28 = arith.constant dense<0.000000e+00> : vector<2x128xf32>
    %37 = tpu.matmul %35, %36, %cst_28 {dimension_numbers = #tpu.dot_dimension_numbers<[1], [0], [0], [1], [0, 0, 1, 1], [], []>} : vector<2x128xbf16>, vector<128x128xbf16>, vector<2x128xf32> -> vector<2x128xf32>
    %c0_29 = arith.constant 0 : index
    %c0_30 = arith.constant 0 : index
    %38 = vector.load %arg12[%c0_29, %c0_30] : memref<1x128xf32, #tpu.memory_space<vmem>>, vector<1x128xf32>
    %39 = vector.broadcast %38 : vector<1x128xf32> to vector<2x128xf32>
    %40 = arith.addf %37, %39 : vector<2x128xf32>
    %c0_31 = arith.constant 0 : index
    %c0_32 = arith.constant 0 : index
    %41 = vector.load %arg2[%c0_31, %c0_32] : memref<2x128xf32, #tpu.memory_space<vmem>>, vector<2x128xf32>
    %c0_33 = arith.constant 0 : index
    %c0_34 = arith.constant 0 : index
    %42 = vector.load %arg13[%c0_33, %c0_34] : memref<1x128xf32, #tpu.memory_space<vmem>>, vector<1x128xf32>
    %43 = vector.broadcast %42 : vector<1x128xf32> to vector<2x128xf32>
    %44 = arith.mulf %43, %41 : vector<2x128xf32>
    %45 = arith.addf %40, %44 : vector<2x128xf32>
    %c0_35 = arith.constant 0 : index
    %c0_36 = arith.constant 0 : index
    %46 = vector.load %arg14[%c0_35, %c0_36] : memref<1x128xf32, #tpu.memory_space<vmem>>, vector<1x128xf32>
    %47 = arith.mulf %41, %41 : vector<2x128xf32>
    %cst_37 = arith.constant 5.000000e-01 : f32
    %48 = vector.broadcast %cst_37 : f32 to vector<2x128xf32>
    %49 = arith.mulf %48, %47 : vector<2x128xf32>
    %50 = vector.broadcast %46 : vector<1x128xf32> to vector<2x128xf32>
    %51 = arith.subf %50, %49 : vector<2x128xf32>
    %cst_38 = arith.constant dense<0.000000e+00> : vector<2xf32>
    %52 = vector.multi_reduction <add>, %51, %cst_38 [1] : vector<2x128xf32> to vector<2xf32>
    %53 = vector.shape_cast %52 : vector<2xf32> to vector<2x1xf32>
    %54 = tpu.iota {dimensions = array<i32: 1>} : vector<2x128xi32>
    %c4_i32 = arith.constant 4 : i32
    %55 = vector.broadcast %c4_i32 : i32 to vector<2x128xi32>
    %56 = arith.cmpi eq, %54, %55 : vector<2x128xi32>
    %cst_39 = arith.constant 0.000000e+00 : f32
    %57 = vector.shape_cast %53 : vector<2x1xf32> to vector<2x1xf32>
    %58 = vector.broadcast %57 : vector<2x1xf32> to vector<2x128xf32>
    %59 = vector.broadcast %cst_39 : f32 to vector<2x128xf32>
    %60 = arith.select %56, %58, %59 : vector<2x128xi1>, vector<2x128xf32>
    %61 = arith.addf %45, %60 : vector<2x128xf32>
    %c0_40 = arith.constant 0 : index
    %c0_41 = arith.constant 0 : index
    %62 = vector.load %arg15[%c0_40, %c0_41] : memref<2x128xf32, #tpu.memory_space<vmem>>, vector<2x128xf32>
    tpu.vector_store %arg15[%c0_40, %c0_41], %61 {strides = array<i32>} : memref<2x128xf32, #tpu.memory_space<vmem>>, vector<2x128xf32>,
    return
  }
  func.func @transform_0(%arg0: i32) -> (i32, i32) {
    %c0_i32 = arith.constant 0 : i32
    %c0_i32_0 = arith.constant 0 : i32
    return %arg0, %c0_i32 : i32, i32
  }
  func.func @transform_1(%arg0: i32) -> (i32, i32) {
    %c0_i32 = arith.constant 0 : i32
    %c0_i32_0 = arith.constant 0 : i32
    return %arg0, %c0_i32 : i32, i32
  }
  func.func @transform_2(%arg0: i32) -> (i32, i32) {
    %c0_i32 = arith.constant 0 : i32
    %c0_i32_0 = arith.constant 0 : i32
    %c0_i32_1 = arith.constant 0 : i32
    return %c0_i32, %c0_i32_0 : i32, i32
  }
  func.func @transform_3(%arg0: i32) -> (i32, i32) {
    %c0_i32 = arith.constant 0 : i32
    %c0_i32_0 = arith.constant 0 : i32
    %c0_i32_1 = arith.constant 0 : i32
    return %c0_i32, %c0_i32_0 : i32, i32
  }
  func.func @transform_4(%arg0: i32) -> (i32, i32, i32) {
    %c0_i32 = arith.constant 0 : i32
    %c0_i32_0 = arith.constant 0 : i32
    %c0_i32_1 = arith.constant 0 : i32
    %c0_i32_2 = arith.constant 0 : i32
    return %c0_i32, %c0_i32_0, %c0_i32_1 : i32, i32, i32
  }
  func.func @transform_5(%arg0: i32) -> (i32, i32) {
    %c0_i32 = arith.constant 0 : i32
    %c0_i32_0 = arith.constant 0 : i32
    %c0_i32_1 = arith.constant 0 : i32
    return %c0_i32, %c0_i32_0 : i32, i32
  }
  func.func @transform_6(%arg0: i32) -> (i32, i32) {
    %c0_i32 = arith.constant 0 : i32
    %c0_i32_0 = arith.constant 0 : i32
    %c0_i32_1 = arith.constant 0 : i32
    return %c0_i32, %c0_i32_0 : i32, i32
  }
  func.func @transform_7(%arg0: i32) -> (i32, i32) {
    %c0_i32 = arith.constant 0 : i32
    %c0_i32_0 = arith.constant 0 : i32
    %c0_i32_1 = arith.constant 0 : i32
    return %c0_i32, %c0_i32_0 : i32, i32
  }
  func.func @transform_8(%arg0: i32) -> (i32, i32) {
    %c0_i32 = arith.constant 0 : i32
    %c0_i32_0 = arith.constant 0 : i32
    %c0_i32_1 = arith.constant 0 : i32
    return %c0_i32, %c0_i32_0 : i32, i32
  }
  func.func @transform_9(%arg0: i32) -> (i32, i32) {
    %c0_i32 = arith.constant 0 : i32
    %c0_i32_0 = arith.constant 0 : i32
    %c0_i32_1 = arith.constant 0 : i32
    return %c0_i32, %c0_i32_0 : i32, i32
  }
  func.func @transform_10(%arg0: i32) -> (i32, i32) {
    %c0_i32 = arith.constant 0 : i32
    %c0_i32_0 = arith.constant 0 : i32
    %c0_i32_1 = arith.constant 0 : i32
    return %c0_i32, %c0_i32_0 : i32, i32
  }
  func.func @transform_11(%arg0: i32) -> (i32, i32) {
    %c0_i32 = arith.constant 0 : i32
    %c0_i32_0 = arith.constant 0 : i32
    %c0_i32_1 = arith.constant 0 : i32
    return %c0_i32, %c0_i32_0 : i32, i32
  }
  func.func @transform_12(%arg0: i32) -> (i32, i32) {
    %c0_i32 = arith.constant 0 : i32
    %c0_i32_0 = arith.constant 0 : i32
    %c0_i32_1 = arith.constant 0 : i32
    return %c0_i32, %c0_i32_0 : i32, i32
  }
  func.func @transform_13(%arg0: i32) -> (i32, i32) {
    %c0_i32 = arith.constant 0 : i32
    %c0_i32_0 = arith.constant 0 : i32
    %c0_i32_1 = arith.constant 0 : i32
    return %c0_i32, %c0_i32_0 : i32, i32
  }
  func.func @transform_14(%arg0: i32) -> (i32, i32) {
    %c0_i32 = arith.constant 0 : i32
    %c0_i32_0 = arith.constant 0 : i32
    return %arg0, %c0_i32 : i32, i32
  }
}

</mosaic_0001>

<bundles_post_ra>
// kernel: actor_critic_forward.3
= control target key start
LH: loop header
LB: loop body
LE: loop exit
PB: predicated region body
PF: predicated region fallthrough
CT: control target
= control target key end

     0   :  { %s704_s12 = smov 0   ;;  %s800_s0 = inlined_call_operand.vmem [shape: bf16[128,256], index: 0, kind: input, shape index: {}]   ;;  %s801_s1 = inlined_call_operand.vmem [shape: bf16[256,128], index: 1, kind: input, shape index: {}]   ;;  %s802_s2 = inlined_call_operand.vmem [shape: f32[1,128], index: 2, kind: input, shape index: {}]   ;;  %s803_s3 = inlined_call_operand.vmem [shape: bf16[128,128], index: 3, kind: output, shape index: {}]  }
   0x1 LB: > { %s495_s13 = sadd.s32 4294967295, %s682_s12   ;;  %p499_p0 = scmp.ge.s32.totalorder %s682_s12, 1  ;;  %s682_s12 = sphi %s704_s12, %s13_s12  }
   0x2   : > { %p139_p1 = scmp.lt.s32.totalorder %s682_s12, 3 }
   0x4   : > { %p140_p2 = pnand %p499_p0, %p139_p1 }
   0x5   : > { %s500_s26 = sshll.u32 (!%p140_p2), %s495_s13, 3 }
   0x6   : > { %143 = sbr.rel (%p140_p2) target bundleno = 208 (0xd0), region = 32  ;;  %p165_p3 = scmp.lt.s32.totalorder (!%p140_p2), %s500_s26, 15 }
   0xb   : > { %v619_v0 = vld [vmem:[%s801_s1 + $0x38] sm:$0xff]  ;;  %v618_v2 = vld [vmem:[%s801_s1 + $0x30] sm:$0xff]  ;;  %v617_v4 = vld [vmem:[%s801_s1 + $0x28] sm:$0xff]  ;;  %s805_s26 = smov (!%p165_p3, %s500_s26), 15 }
   0xc   : > { %v627_v1 = vld [vmem:[%s801_s1 + $0x78] sm:$0xff]  ;;  %357 = vmatpush.bf16.msra.mxu0 %v619_v0  ;;  %651 = vmatpush.bf16.msra.mxu2 %v619_v0  ;;  %v626_v3 = vld [vmem:[%s801_s1 + $0x70] sm:$0xff]  ;;  %v625_v5 = vld [vmem:[%s801_s1 + $0x68] sm:$0xff]  ;;  %s603_s13 = sshll.u32 %s805_s26, 3  ;;  %s504_s28 = sshll.u32 %s805_s26, 2 }
   0xd   : > { %386 = vmatpush.bf16.msra.mxu1 %v627_v1  ;;  %659 = vmatpush.bf16.msra.mxu3 %v627_v1  ;;  %v616_v6 = vld [vmem:[%s801_s1 + $0x20] sm:$0xff]  ;;  %v615_v8 = vld [vmem:[%s801_s1 + $0x18] sm:$0xff]  ;;  %v614_v10 = vld [vmem:[%s801_s1 + $0x10] sm:$0xff]  ;;  %s757_s18 = scalar_lea.vmem %s800_s0, %s603_s13  ;;  %s791_s4 = scalar_lea.vmem %s803_s3, %s504_s28 }
   0xe   : > { %v624_v7 = vld [vmem:[%s801_s1 + $0x60] sm:$0xff]  ;;  %v623_v9 = vld [vmem:[%s801_s1 + $0x58] sm:$0xff]  ;;  %v622_v11 = vld [vmem:[%s801_s1 + $0x50] sm:$0xff] }
   0xf   : > { %v613_v12 = vld [vmem:[%s801_s1 + $0x8] sm:$0xff]  ;;  %v612_v14 = vld [vmem:[%s801_s1] sm:$0xff]  ;;  %v515_v28 = vld [vmem:[%s757_s18 + $0x10] sm:$0xf] }
  0x10   : > { %358 = vmatpush.bf16.msra.mxu0 %v618_v2  ;;  %652 = vmatpush.bf16.msra.mxu2 %v618_v2  ;;  %v621_v13 = vld [vmem:[%s801_s1 + $0x48] sm:$0xff]  ;;  %v620_v15 = vld [vmem:[%s801_s1 + $0x40] sm:$0xff]  ;;  %v607_v29 = vld [vmem:[%s757_s18 + $0x14] sm:$0xf0] }
  0x11   : > { %387 = vmatpush.bf16.msra.mxu1 %v626_v3  ;;  %660 = vmatpush.bf16.msra.mxu3 %v626_v3  ;;  %v507_v16 = vld [vmem:[%s757_s18] sm:$0xf]  ;;  %v605_v17 = vld [vmem:[%s757_s18 + $0x4] sm:$0xf0]  ;;  %v604_v20 = vld [vmem:[%s757_s18 + $0x4] sm:$0xf]  ;;  %v516_v36 = vor.u32 %v607_v29, %v515_v28 }
  0x12   : > { %v523_v18 = vld [vmem:[%s757_s18 + $0x20] sm:$0xf]  ;;  %v609_v19 = vld [vmem:[%s757_s18 + $0x24] sm:$0xf0]  ;;  %v509_v21 = vld [vmem:[%s757_s18 + $0x8] sm:$0xf0]  ;;  %v508_v24 = vor.u32 %v605_v17, %v507_v16 }
  0x13   : > { %v608_v22 = vld [vmem:[%s757_s18 + $0x24] sm:$0xf]  ;;  %v525_v23 = vld [vmem:[%s757_s18 + $0x28] sm:$0xf0]  ;;  %v524_v25 = vor.u32 %v609_v19, %v523_v18  ;;  %v512_v26 = vor.u32 %v604_v20, %v509_v21  ;;  %v531_v30 = vld [vmem:[%s757_s18 + $0x30] sm:$0xf] }
  0x14   : > { %359 = vmatpush.bf16.msra.mxu0 %v617_v4  ;;  %653 = vmatpush.bf16.msra.mxu2 %v617_v4  ;;  %v528_v27 = vor.u32 %v608_v22, %v525_v23  ;;  %v611_v31 = vld [vmem:[%s757_s18 + $0x34] sm:$0xf0]  ;;  %v606_v32 = vld [vmem:[%s757_s18 + $0x14] sm:$0xf]  ;;  %v517_v33 = vld [vmem:[%s757_s18 + $0x18] sm:$0xf0] }
  0x15   : > { %388 = vmatpush.bf16.msra.mxu1 %v625_v5  ;;  %661 = vmatpush.bf16.msra.mxu3 %v625_v5  ;;  %v610_v34 = vld [vmem:[%s757_s18 + $0x34] sm:$0xf]  ;;  %v533_v35 = vld [vmem:[%s757_s18 + $0x38] sm:$0xf0]  ;;  %v532_v37 = vor.u32 %v611_v31, %v531_v30  ;;  %v520_v38 = vor.u32 %v606_v32, %v517_v33  ;;  %v675_v41 = vld [vmem:[%s802_s2] ss:$0 sm:$0xff] }
  0x16   : > { %v536_v39 = vor.u32 %v610_v34, %v533_v35 }
  0x18   : > { %360 = vmatpush.bf16.msra.mxu0 %v616_v6  ;;  %654 = vmatpush.bf16.msra.mxu2 %v616_v6 }
  0x19   : > { %389 = vmatpush.bf16.msra.mxu1 %v624_v7  ;;  %662 = vmatpush.bf16.msra.mxu3 %v624_v7 }
  0x1c   : > { %361 = vmatpush.bf16.msra.mxu0 %v615_v8  ;;  %655 = vmatpush.bf16.msra.mxu2 %v615_v8 }
  0x1d   : > { %390 = vmatpush.bf16.msra.mxu1 %v623_v9  ;;  %663 = vmatpush.bf16.msra.mxu3 %v623_v9 }
  0x20   : > { %362 = vmatpush.bf16.msra.mxu0 %v614_v10  ;;  %656 = vmatpush.bf16.msra.mxu2 %v614_v10 }
  0x21   : > { %391 = vmatpush.bf16.msra.mxu1 %v622_v11  ;;  %664 = vmatpush.bf16.msra.mxu3 %v622_v11 }
  0x24   : > { %363 = vmatpush.bf16.msra.mxu0 %v613_v12  ;;  %657 = vmatpush.bf16.msra.mxu2 %v613_v12 }
  0x25   : > { %392 = vmatpush.bf16.msra.mxu1 %v621_v13  ;;  %665 = vmatpush.bf16.msra.mxu3 %v621_v13 }
  0x28   : > { %364 = vmatpush.bf16.msra.mxu0 %v612_v14  ;;  %658 = vmatpush.bf16.msra.mxu2 %v612_v14 }
  0x29   : > { %393 = vmatpush.bf16.msra.mxu1 %v620_v15  ;;  %666 = vmatpush.bf16.msra.mxu3 %v620_v15 }
  0x2b   : > { %365 = vmatmul.bf16.vlgmr.msra.gmra.mxu0 %v508_v24  ;;  %375 = vmatmul.bf16.vlgmr.msra.gmra.mxu2 %v524_v25 }
  0x2c   : > { %394 = vmatmul.bf16.vlgmr.msra.gmra.mxu1 %v512_v26  ;;  %404 = vmatmul.bf16.vlgmr.msra.gmra.mxu3 %v528_v27 }
  0x3b   : > { %370 = vmatmul.bf16.gmra.mxu0 %v516_v36  ;;  %380 = vmatmul.bf16.gmra.mxu2 %v532_v37 }
  0x3c   : > { %399 = vmatmul.bf16.gmra.mxu1 %v520_v38  ;;  %409 = vmatmul.bf16.gmra.mxu3 %v536_v39 }
  0xa8   : > { %v366_v40 = vpop.f32.mrf.mxu0 }
  0xa9   : > { %v395_v42 = vpop.f32.mrf.mxu1  ;;  %v367_v43 = vadd.f32 %v675_v41, %v366_v40 }
  0xab   : > { %v396_v47 = vadd.f32 %v395_v42, %v367_v43 }
  0xad   : > { %v415_v52 = vmax.f32 %v396_v47, 0.0 }
  0xae   : > { %v376_v44 = vpop.f32.mrf.mxu2 }
  0xaf   : > { %v405_v45 = vpop.f32.mrf.mxu3  ;;  %v377_v50 = vadd.f32 %v675_v41, %v376_v44 }
  0xb0   : > { %v368_v46 = vpop.f32.mrf.mxu0 }
  0xb1   : > { %v369_v48 = vadd.f32 %v675_v41, %v368_v46  ;;  %v397_v49 = vpop.f32.mrf.mxu1  ;;  %v406_v55 = vadd.f32 %v405_v45, %v377_v50 }
  0xb3   : > { %v398_v51 = vadd.f32 %v397_v49, %v369_v48  ;;  %v419_v62 = vmax.f32 %v406_v55, 0.0 }
  0xb5   : > { %v416_v53 = vmax.f32 %v398_v51, 0.0 }
  0xb6   : > { %v378_v54 = vpop.f32.mrf.mxu2 }
  0xb7   : > { %v631_v56 = vpack.c.bf16 %v416_v53, %v415_v52  ;;  %v379_v57 = vadd.f32 %v675_v41, %v378_v54  ;;  %v407_v58 = vpop.f32.mrf.mxu3 }
  0xb8   : > { %v371_v59 = vpop.f32.mrf.mxu0 }
  0xb9   : > { %632 = vst [vmem:[%s791_s4] sm:$0xff] %v631_v56   ;;  %v408_v60 = vadd.f32 %v407_v58, %v379_v57  ;;  %v400_v61 = vpop.f32.mrf.mxu1  ;;  %v372_v1 = vadd.f32 %v675_v41, %v371_v59 }
  0xbb   : > { %v420_v63 = vmax.f32 %v408_v60, 0.0  ;;  %v401_v5 = vadd.f32 %v400_v61, %v372_v1 }
  0xbd   : > { %v641_v0 = vpack.c.bf16 %v420_v63, %v419_v62  ;;  %v417_v10 = vmax.f32 %v401_v5, 0.0 }
  0xbe   : > { %v381_v2 = vpop.f32.mrf.mxu2 }
  0xbf   : > { %649 = vst [vmem:[%s791_s4 + $0x10] sm:$0xff] %v641_v0   ;;  %v410_v3 = vpop.f32.mrf.mxu3  ;;  %v382_v8 = vadd.f32 %v675_v41, %v381_v2 }
  0xc0   : > { %v373_v4 = vpop.f32.mrf.mxu0 }
  0xc1   : > { %v374_v6 = vadd.f32 %v675_v41, %v373_v4  ;;  %v402_v7 = vpop.f32.mrf.mxu1  ;;  %v411_v13 = vadd.f32 %v410_v3, %v382_v8 }
  0xc3   : > { %v403_v9 = vadd.f32 %v402_v7, %v374_v6  ;;  %v421_v18 = vmax.f32 %v411_v13, 0.0 }
  0xc5   : > { %v418_v11 = vmax.f32 %v403_v9, 0.0 }
  0xc6   : > { %v383_v12 = vpop.f32.mrf.mxu2 }
  0xc7   : > { %v636_v14 = vpack.c.bf16 %v418_v11, %v417_v10  ;;  %v384_v15 = vadd.f32 %v675_v41, %v383_v12  ;;  %v412_v16 = vpop.f32.mrf.mxu3 }
  0xc9   : > { %648 = vst [vmem:[%s791_s4 + $0x8] sm:$0xff] %v636_v14   ;;  %v413_v17 = vadd.f32 %v412_v16, %v384_v15 }
  0xcb   : > { %v422_v19 = vmax.f32 %v413_v17, 0.0 }
  0xcd   : > { %v646_v20 = vpack.c.bf16 %v422_v19, %v421_v18 }
  0xcf   : > { %650 = vst [vmem:[%s791_s4 + $0x18] sm:$0xff] %v646_v20  }
  0xd0 PF: > { %s13_s12 = sadd.s32 1, %s682_s12  }
  0xd1   : > { %p10_p4 = scmp.ge.s32.totalorder %s13_s12, 4  }
  0xd3   :  { %12 = sbr.rel (!%p10_p4) target bundleno = 1 (0x1), region = 62 }

// kernel: actor_critic_forward.4
= control target key start
LH: loop header
LB: loop body
LE: loop exit
PB: predicated region body
PF: predicated region fallthrough
CT: control target
= control target key end

     0   :  { %s1177_s12 = smov 0   ;;  %s1179_s13 = smov 0   ;;  %s1358_s0 = inlined_call_operand.vmem [shape: bf16[18,512], index: 0, kind: input, shape index: {}]   ;;  %s1359_s1 = inlined_call_operand.vmem [shape: bf16[512,128], index: 1, kind: input, shape index: {}]   ;;  %s1360_s2 = inlined_call_operand.vmem [shape: f32[1,128], index: 2, kind: input, shape index: {}]   ;;  %s1361_s3 = inlined_call_operand.vmem [shape: bf16[18,128], index: 3, kind: output, shape index: {}]  }
   0x1   :  { %s1181_s14 = smov 0  }
   0x2 LB: > { %s1190_s15 = sadd.s32 4294967295, %s1123_s14   ;;  %s1192_s16 = sadd.s32 1, %s1123_s14   ;;  %s1123_s14 = sphi %s1181_s14, %s1365_s14   ;;  %s1119_s13 = sphi %s1179_s13, %s1364_s13   ;;  %s1115_s12 = sphi %s1177_s12, %s1363_s12  }
   0x3   : > { %s85_s17 = ssub.s32 %s1123_s14, %s1192_s16  ;;  %s88_s18 = sadd.s32 1, %s1119_s13 }
   0x4   : > { %p86_p0 = scmp.eq.s32.totalorder %s85_s17, 0  ;;  %p98_p1 = scmp.ne.s32.totalorder %s1119_s13, %s1115_s12 }
   0x5   : > { %p99_p2 = scmp.eq.s32.totalorder %s1190_s15, 1  ;;  %p769_p3 = scmp.ge.s32.totalorder %s1123_s14, 1 }
   0x6   : > { %s1200_s19 = scalar_select %p86_p0, %s1119_s13, %s88_s18  }
   0x7   : > { %p1202_p4 = por %p99_p2, %p98_p1  ;;  %p149_p5 = scmp.lt.s32.totalorder %s1123_s14, 3 }
   0x9   : > { %p150_p6 = pnand %p769_p3, %p149_p5 }
   0xa   : > { %s1243_s24 = sshll.u32 (!%p150_p6), %s1190_s15, 1  ;;  %s175_s5 = sand.u32 (!%p150_p6), 1, %s1115_s12  }
   0xb   : > { %153 = sbr.rel (%p150_p6) target bundleno = 238 (0xee), region = 32  ;;  %p184_p7 = scmp.lt.s32.totalorder (!%p150_p6), %s1243_s24, 2 }
   0xc   : > { %s770_s6 = sshll.u32 (!%p150_p6), %s175_s5, 3 }
   0xd   : > { %s1314_s7 = scalar_lea.vmem (!%p150_p6), [#allocation2], %s770_s6  }
  0x10   : > { %v947_v0 = vld [vmem:[%s1359_s1 + $0x38] sm:$0xff]  ;;  %v946_v4 = vld [vmem:[%s1359_s1 + $0x30] sm:$0xff]  ;;  %v945_v8 = vld [vmem:[%s1359_s1 + $0x28] sm:$0xff]  ;;  %s185_s18 = scalar_select %p184_p7, %s1243_s24, 2 }
  0x11   : > { %v955_v1 = vld [vmem:[%s1359_s1 + $0x78] sm:$0xff]  ;;  %484 = vmatpush.bf16.msra.mxu0 %v947_v0  ;;  %v954_v5 = vld [vmem:[%s1359_s1 + $0x70] sm:$0xff]  ;;  %v953_v9 = vld [vmem:[%s1359_s1 + $0x68] sm:$0xff]  ;;  %s554_s8 = ssub.s32 (%p1202_p4), 3, %s1243_s24  ;;  %s972_s9 = sshll.u32 (%p1202_p4), %s1190_s15, 3 }
  0x12   : > { %v963_v2 = vld [vmem:[%s1359_s1 + $0xb8] sm:$0xff]  ;;  %498 = vmatpush.bf16.msra.mxu1 %v955_v1  ;;  %v962_v6 = vld [vmem:[%s1359_s1 + $0xb0] sm:$0xff]  ;;  %v961_v10 = vld [vmem:[%s1359_s1 + $0xa8] sm:$0xff]  ;;  %s935_s30 = sshll.u32 %s185_s18, 4  ;;  %p555_p8 = scmp.lt.s32.totalorder (%p1202_p4), %s554_s8, 2 }
  0x13   : > { %v971_v3 = vld [vmem:[%s1359_s1 + $0xf8] sm:$0xff]  ;;  %512 = vmatpush.bf16.msra.mxu2 %v963_v2  ;;  %v970_v7 = vld [vmem:[%s1359_s1 + $0xf0] sm:$0xff]  ;;  %v969_v11 = vld [vmem:[%s1359_s1 + $0xe8] sm:$0xff]  ;;  %s188_s10 = scalar_lea.vmem %s1358_s0, %s935_s30  ;;  %s1324_s11 = scalar_lea.vmem (%p1202_p4), %s1361_s3, %s972_s9  }
  0x14   : > { %526 = vmatpush.bf16.msra.mxu3 %v971_v3  ;;  %v944_v12 = vld [vmem:[%s1359_s1 + $0x20] sm:$0xff]  ;;  %v943_v16 = vld [vmem:[%s1359_s1 + $0x18] sm:$0xff]  ;;  %v942_v20 = vld [vmem:[%s1359_s1 + $0x10] sm:$0xff] }
  0x15   : > { %485 = vmatpush.bf16.msra.mxu0 %v946_v4  ;;  %v952_v13 = vld [vmem:[%s1359_s1 + $0x60] sm:$0xff]  ;;  %v951_v17 = vld [vmem:[%s1359_s1 + $0x58] sm:$0xff]  ;;  %v950_v21 = vld [vmem:[%s1359_s1 + $0x50] sm:$0xff] }
  0x16   : > { %499 = vmatpush.bf16.msra.mxu1 %v954_v5  ;;  %v960_v14 = vld [vmem:[%s1359_s1 + $0xa0] sm:$0xff]  ;;  %v959_v18 = vld [vmem:[%s1359_s1 + $0x98] sm:$0xff]  ;;  %v958_v22 = vld [vmem:[%s1359_s1 + $0x90] sm:$0xff] }
  0x17   : > { %513 = vmatpush.bf16.msra.mxu2 %v962_v6  ;;  %v968_v15 = vld [vmem:[%s1359_s1 + $0xe0] sm:$0xff]  ;;  %v967_v19 = vld [vmem:[%s1359_s1 + $0xd8] sm:$0xff]  ;;  %v966_v23 = vld [vmem:[%s1359_s1 + $0xd0] sm:$0xff] }
  0x18   : > { %527 = vmatpush.bf16.msra.mxu3 %v970_v7  ;;  %v941_v24 = vld [vmem:[%s1359_s1 + $0x8] sm:$0xff]  ;;  %v940_v28 = vld [vmem:[%s1359_s1] sm:$0xff]  ;;  %v938_v33 = vld [vmem:[%s188_s10 + $0xc] sm:$0xf0] }
  0x19   : > { %486 = vmatpush.bf16.msra.mxu0 %v945_v8  ;;  %v949_v25 = vld [vmem:[%s1359_s1 + $0x48] sm:$0xff]  ;;  %v948_v29 = vld [vmem:[%s1359_s1 + $0x40] sm:$0xff]  ;;  %v778_v35 = vld [vmem:[%s188_s10 + $0x10] sm:$0xf0] }
  0x1a   : > { %500 = vmatpush.bf16.msra.mxu1 %v953_v9  ;;  %v957_v26 = vld [vmem:[%s1359_s1 + $0x88] sm:$0xff]  ;;  %v956_v30 = vld [vmem:[%s1359_s1 + $0x80] sm:$0xff]  ;;  %v939_v37 = vld [vmem:[%s188_s10 + $0x14] sm:$0xf0] }
  0x1b   : > { %514 = vmatpush.bf16.msra.mxu2 %v961_v10  ;;  %v965_v27 = vld [vmem:[%s1359_s1 + $0xc8] sm:$0xff]  ;;  %v964_v31 = vld [vmem:[%s1359_s1 + $0xc0] sm:$0xff]  ;;  %v786_v39 = vld [vmem:[%s188_s10 + $0x18] sm:$0xf0] }
  0x1c   : > { %528 = vmatpush.bf16.msra.mxu3 %v969_v11  ;;  %v776_v32 = vld [vmem:[%s188_s10] sm:$0xf]  ;;  %v936_v34 = vld [vmem:[%s188_s10 + $0x4] sm:$0xf]  ;;  %v784_v36 = vld [vmem:[%s188_s10 + $0x8] sm:$0xf] }
  0x1d   : > { %487 = vmatpush.bf16.msra.mxu0 %v944_v12  ;;  %v937_v38 = vld [vmem:[%s188_s10 + $0xc] sm:$0xf]  ;;  %v777_v40 = vor.u32 %v938_v33, %v776_v32  ;;  %v781_v41 = vor.u32 %v936_v34, %v778_v35  ;;  %v785_v42 = vor.u32 %v939_v37, %v784_v36  ;;  %v1068_v44 = vld [vmem:[%s1360_s2] ss:$0 sm:$0xff] }
  0x1e   : > { %501 = vmatpush.bf16.msra.mxu1 %v952_v13  ;;  %v789_v43 = vor.u32 %v937_v38, %v786_v39 }
  0x1f   : > { %515 = vmatpush.bf16.msra.mxu2 %v960_v14 }
  0x20   : > { %529 = vmatpush.bf16.msra.mxu3 %v968_v15 }
  0x21   : > { %488 = vmatpush.bf16.msra.mxu0 %v943_v16 }
  0x22   : > { %502 = vmatpush.bf16.msra.mxu1 %v951_v17 }
  0x23   : > { %516 = vmatpush.bf16.msra.mxu2 %v959_v18 }
  0x24   : > { %530 = vmatpush.bf16.msra.mxu3 %v967_v19 }
  0x25   : > { %489 = vmatpush.bf16.msra.mxu0 %v942_v20 }
  0x26   : > { %503 = vmatpush.bf16.msra.mxu1 %v950_v21 }
  0x27   : > { %517 = vmatpush.bf16.msra.mxu2 %v958_v22 }
  0x28   : > { %531 = vmatpush.bf16.msra.mxu3 %v966_v23 }
  0x29   : > { %490 = vmatpush.bf16.msra.mxu0 %v941_v24 }
  0x2a   : > { %504 = vmatpush.bf16.msra.mxu1 %v949_v25 }
  0x2b   : > { %518 = vmatpush.bf16.msra.mxu2 %v957_v26 }
  0x2c   : > { %532 = vmatpush.bf16.msra.mxu3 %v965_v27 }
  0x2d   : > { %491 = vmatpush.bf16.msra.mxu0 %v940_v28 }
  0x2e   : > { %505 = vmatpush.bf16.msra.mxu1 %v948_v29 }
  0x2f   : > { %519 = vmatpush.bf16.msra.mxu2 %v956_v30 }
  0x30   : > { %533 = vmatpush.bf16.msra.mxu3 %v964_v31  ;;  %492 = vmatmul.bf16.vlgmr.msra.gmra.mxu0 %v777_v40 }
  0x31   : > { %506 = vmatmul.bf16.vlgmr.msra.gmra.mxu1 %v781_v41 }
  0x32   : > { %520 = vmatmul.bf16.vlgmr.msra.gmra.mxu2 %v785_v42 }
  0x33   : > { %534 = vmatmul.bf16.vlgmr.msra.gmra.mxu3 %v789_v43 }
  0xad   : > { %v493_v45 = vpop.f32.mrf.mxu0 }
  0xae   : > { %v507_v46 = vpop.f32.mrf.mxu1  ;;  %v494_v47 = vadd.f32 %v1068_v44, %v493_v45 }
  0xb0   : > { %v508_v50 = vadd.f32 %v507_v46, %v494_v47 }
  0xb5   : > { %v521_v48 = vpop.f32.mrf.mxu2  ;;  %v495_v51 = vpop.f32.mrf.mxu0 }
  0xb6   : > { %v535_v49 = vpop.f32.mrf.mxu3  ;;  %v496_v52 = vadd.f32 %v1068_v44, %v495_v51  ;;  %v522_v53 = vadd.f32 %v521_v48, %v508_v50  ;;  %v509_v54 = vpop.f32.mrf.mxu1 }
  0xb8   : > { %v510_v55 = vadd.f32 %v509_v54, %v496_v52  ;;  %v536_v57 = vadd.f32 %v535_v49, %v522_v53 }
  0xba   : > { %v540_v61 = vmax.f32 %v536_v57, 0.0 }
  0xbd   : > { %v523_v56 = vpop.f32.mrf.mxu2 }
  0xbe   : > { %v524_v58 = vadd.f32 %v523_v56, %v510_v55  ;;  %v537_v59 = vpop.f32.mrf.mxu3 }
  0xc0   : > { %v538_v60 = vadd.f32 %v537_v59, %v524_v58 }
  0xc2   : > { %v541_v62 = vmax.f32 %v538_v60, 0.0  ;;  %552 = sbr.rel (!%p1202_p4) target bundleno = 238 (0xee), region = 36 }
  0xc4   : > { %v978_v63 = vpack.c.bf16 %v541_v62, %v540_v61 }
  0xc6   : > { %979 = vst [vmem:[%s1314_s7] sm:$0xff] %v978_v63  }
  0xc7   : > { %s1367_s8 = smov (!%p555_p8, %s554_s8), 2 }
  0xc8   : > { %s920_s14 = sshll.u32 %s1367_s8, 2 }
  0xc9   : > { %p923_p9 = scmp.eq.s32.totalorder %s920_s14, 0 }
  0xca   : > { %s1330_s17 = sshrl.u32 (!%p923_p9), %s1367_s8, 1 }
  0xcb   : > { %563 = sbr.rel (%p923_p9) target bundleno = 238 (0xee), region = 40  ;;  %p924_p10 = scmp.le.s32.totalorder (!%p923_p9), %s1330_s17, 0 }
  0xd0   : > { %722 = sbr.rel (%p924_p10) target bundleno = 221 (0xdd), region = 112  ;;  %s1125_s15 = smov (!%p924_p10), %s1324_s11  }
  0xd1   : > { %s1129_s20 = smov (!%p924_p10), %s1314_s7   ;;  %s1133_s24 = smov (!%p924_p10), 0  }
  0xd2   : > { %s1137_s18 = smov (!%p924_p10), 0  }
  0xd5 LB: >> { %v580_v0 = vld [vmem:[%s1131_s20] sm:$0xf]  ;;  %v582_v1 = vld [vmem:[%s1131_s20 + $0x4] sm:$0xf]  ;;  %s584_s21 = sadd.s32 1, %s1135_s24  ;;  %s574_s18 = sadd.s32 1, %s1139_s18   ;;  %s1139_s18 = sphi %s1137_s18, %s574_s18   ;;  %s1135_s24 = sphi %s1133_s24, %s1134_s24   ;;  %s1131_s20 = sphi %s1129_s20, %s589_s20   ;;  %s1127_s15 = sphi %s1125_s15, %s590_s15  }
  0xd6   : >> { %581 = vst [vmem:[%s1127_s15] sm:$0xf] %v580_v0  ;;  %p585_p11 = scmp.ge.s32.totalorder %s584_s21, %s1330_s17  ;;  %p573_p12 = scmp.ge.s32.totalorder %s574_s18, %s1330_s17 }
  0xd7   : >> { %583 = vst [vmem:[%s1127_s15 + $0x4] sm:$0xf] %v582_v1 }
  0xd8   : >> { %s1369_s21 = smov (%p585_p11, %s584_s21), 0  ;;  %576 = sbr.rel (!%p573_p12) target bundleno = 213 (0xd5), region = 118 }
  0xd9   : >> { %s925_s22 = sshll.u32 %s1369_s21, 3  ;;  %s1134_s24 = smov %s1369_s21  }
  0xda   : >> { %s589_s20 = scalar_lea.vmem %s1314_s7, %s925_s22 [#allocation2]   ;;  %s590_s15 = scalar_lea.vmem %s1324_s11, %s925_s22  }
  0xdd PF: > { %s1340_s23 = sand.u32 1, %s1367_s8   ;;  %s973_s25 = sshll.u32 %s1330_s17, 3 }
  0xde   : > { %s595_s26 = scalar_lea.vmem %s1314_s7, %s973_s25 [#allocation2]   ;;  %s597_s27 = scalar_lea.vmem %s1324_s11, %s973_s25  }
  0xdf   : > { %p930_p13 = scmp.le.s32.totalorder %s1340_s23, 0 }
  0xe0   : > { %s1141_s28 = smov (!%p930_p13), %s597_s27   ;;  %s1145_s29 = smov (!%p930_p13), %s595_s26  }
  0xe1   : > { %736 = sbr.rel (%p930_p13) target bundleno = 238 (0xee), region = 123  ;;  %s1149_s30 = smov (!%p930_p13), 0  }
  0xe2   : > { %s1153_s4 = smov (!%p930_p13), 0  }
  0xe6 LB: >> { %v607_v2 = vld [vmem:[%s1147_s29] sm:$0xf]  ;;  %s609_s5 = sadd.s32 1, %s1151_s30  ;;  %s601_s4 = sadd.s32 1, %s1155_s4   ;;  %s1155_s4 = sphi %s1153_s4, %s601_s4   ;;  %s1151_s30 = sphi %s1149_s30, %s1150_s30   ;;  %s1147_s29 = sphi %s1145_s29, %s614_s29   ;;  %s1143_s28 = sphi %s1141_s28, %s615_s28  }
  0xe7   : >> { %608 = vst [vmem:[%s1143_s28] sm:$0xf] %v607_v2  ;;  %p610_p0 = scmp.ge.s32.totalorder %s609_s5, %s1340_s23  ;;  %p600_p1 = scmp.ge.s32.totalorder %s601_s4, %s1340_s23 }
  0xe9   : >> { %s1371_s5 = smov (%p610_p0, %s609_s5), 0  ;;  %603 = sbr.rel (!%p600_p1) target bundleno = 230 (0xe6), region = 129 }
  0xea   : >> { %s931_s6 = sshll.u32 %s1371_s5, 2  ;;  %s1150_s30 = smov %s1371_s5  }
  0xeb   : >> { %s614_s29 = scalar_lea.vmem %s595_s26, %s931_s6 [#allocation2]   ;;  %s615_s28 = scalar_lea.vmem %s597_s27, %s931_s6  }
  0xee PF: > { %p10_p2 = scmp.ge.s32.totalorder %s1192_s16, 4   ;;  %s1363_s12 = smov %s1119_s13 }
  0xef   : > { %s1364_s13 = smov %s1200_s19  ;;  %s1365_s14 = smov %s1192_s16 }
  0xf0   :  { %12 = sbr.rel (!%p10_p2) target bundleno = 2 (0x2), region = 140 }

// kernel: actor_critic_forward.5
= control target key start
LH: loop header
LB: loop body
LE: loop exit
PB: predicated region body
PF: predicated region fallthrough
CT: control target
= control target key end

     0   :  { %vm352_vm0 = vcmask 523264   ;;  %vm679_vm1 = vcmask 1041408   ;;  %s1261_s2 = inlined_call_operand.vmem [shape: bf16[576,64], index: 2, kind: input, shape index: {}]   ;;  %s1262_s0 = inlined_call_operand.vmem [shape: bf16[2,576], index: 0, kind: input, shape index: {}]   ;;  %s1263_s3 = inlined_call_operand.vmem [shape: f32[1,64], index: 3, kind: input, shape index: {}]   ;;  %s1264_s5 = inlined_call_operand.vmem [shape: f32[1,64], index: 5, kind: input, shape index: {}]   ;;  %s1265_s4 = inlined_call_operand.vmem [shape: bf16[1,64,64], index: 4, kind: input, shape index: {}]   ;;  %s1266_s6 = inlined_call_operand.vmem [shape: bf16[64,64], index: 6, kind: input, shape index: {}]   ;;  %s1267_s7 = inlined_call_operand.vmem [shape: f32[1,64], index: 7, kind: input, shape index: {}]   ;;  %s1268_s8 = inlined_call_operand.vmem [shape: bf16[64,128], index: 8, kind: input, shape index: {}]   ;;  %s1269_s9 = inlined_call_operand.vmem [shape: f32[1,128], index: 9, kind: input, shape index: {}]   ;;  %s1270_s10 = inlined_call_operand.vmem [shape: bf16[128,128], index: 10, kind: input, shape index: {}]   ;;  %s1271_s13 = inlined_call_operand.vmem [shape: f32[1,128], index: 13, kind: input, shape index: {}]   ;;  %s1272_s11 = inlined_call_operand.vmem [shape: f32[1,128], index: 11, kind: input, shape index: {}]   ;;  %s1273_s12 = inlined_call_operand.vmem [shape: f32[1,128], index: 12, kind: input, shape index: {}]   ;;  %s1274_s1 = inlined_call_operand.vmem [shape: f32[2,128], index: 1, kind: input, shape index: {}]   ;;  %s1275_s14 = inlined_call_operand.vmem [shape: f32[2,128], index: 14, kind: output, shape index: {}]  }
   0x1   :  { %v928_v0 = vld [vmem:[%s1261_s2 + $0x38] sm:$0xff]  ;;  %v927_v4 = vld [vmem:[%s1261_s2 + $0x30] sm:$0xff]  ;;  %v926_v8 = vld [vmem:[%s1261_s2 + $0x28] sm:$0xff] }
   0x2   :  { %v936_v1 = vld [vmem:[%s1261_s2 + $0x78] sm:$0xff]  ;;  %355 = vmatpush.bf16.msra.mxu0 %v928_v0  ;;  %v935_v5 = vld [vmem:[%s1261_s2 + $0x70] sm:$0xff]  ;;  %v934_v9 = vld [vmem:[%s1261_s2 + $0x68] sm:$0xff] }
   0x3   :  { %v944_v2 = vld [vmem:[%s1261_s2 + $0xb8] sm:$0xff]  ;;  %368 = vmatpush.bf16.msra.mxu1 %v936_v1  ;;  %v943_v6 = vld [vmem:[%s1261_s2 + $0xb0] sm:$0xff]  ;;  %v942_v10 = vld [vmem:[%s1261_s2 + $0xa8] sm:$0xff] }
   0x4   :  { %v952_v3 = vld [vmem:[%s1261_s2 + $0xf8] sm:$0xff]  ;;  %381 = vmatpush.bf16.msra.mxu2 %v944_v2  ;;  %v951_v7 = vld [vmem:[%s1261_s2 + $0xf0] sm:$0xff]  ;;  %v950_v11 = vld [vmem:[%s1261_s2 + $0xe8] sm:$0xff] }
   0x5   :  { %394 = vmatpush.bf16.msra.mxu3 %v952_v3  ;;  %v925_v12 = vld [vmem:[%s1261_s2 + $0x20] sm:$0xff]  ;;  %v924_v17 = vld [vmem:[%s1261_s2 + $0x18] sm:$0xff]  ;;  %v923_v21 = vld [vmem:[%s1261_s2 + $0x10] sm:$0xff] }
   0x6   :  { %356 = vmatpush.bf16.msra.mxu0 %v927_v4  ;;  %v933_v13 = vld [vmem:[%s1261_s2 + $0x60] sm:$0xff]  ;;  %v932_v18 = vld [vmem:[%s1261_s2 + $0x58] sm:$0xff]  ;;  %v931_v22 = vld [vmem:[%s1261_s2 + $0x50] sm:$0xff] }
   0x7   :  { %369 = vmatpush.bf16.msra.mxu1 %v935_v5  ;;  %v48_v14 = vld [vmem:[%s1262_s0] sm:$0x1f]  ;;  %v940_v19 = vld [vmem:[%s1261_s2 + $0x98] sm:$0xff]  ;;  %v939_v23 = vld [vmem:[%s1261_s2 + $0x90] sm:$0xff] }
   0x8   :  { %382 = vmatpush.bf16.msra.mxu2 %v943_v6  ;;  %v941_v15 = vld [vmem:[%s1261_s2 + $0xa0] sm:$0xff]  ;;  %126 = vst [vmem:[#allocation1] ss:$9 sm:$0xff] %v48_v14  ;;  %v948_v20 = vld [vmem:[%s1261_s2 + $0xd8] sm:$0xff]  ;;  %v947_v24 = vld [vmem:[%s1261_s2 + $0xd0] sm:$0xff] }
   0x9   :  { %395 = vmatpush.bf16.msra.mxu3 %v951_v7  ;;  %v949_v16 = vld [vmem:[%s1261_s2 + $0xe0] sm:$0xff]  ;;  %v922_v25 = vld [vmem:[%s1261_s2 + $0x8] sm:$0xff]  ;;  %v956_v33 = vld [vmem:[%s1261_s2 + $0x118] sm:$0xff] }
   0xa   :  { %357 = vmatpush.bf16.msra.mxu0 %v926_v8  ;;  %v930_v26 = vld [vmem:[%s1261_s2 + $0x48] sm:$0xff]  ;;  %v921_v29 = vld [vmem:[%s1261_s2] sm:$0xff]  ;;  %v955_v38 = vld [vmem:[%s1261_s2 + $0x110] sm:$0xff] }
   0xb   :  { %370 = vmatpush.bf16.msra.mxu1 %v934_v9  ;;  %v938_v27 = vld [vmem:[%s1261_s2 + $0x88] sm:$0xff]  ;;  %v929_v30 = vld [vmem:[%s1261_s2 + $0x40] sm:$0xff]  ;;  %v960_v42 = vld [vmem:[%s1265_s4 + $0x18] sm:$0xff] }
   0xc   :  { %383 = vmatpush.bf16.msra.mxu2 %v942_v10  ;;  %v946_v28 = vld [vmem:[%s1261_s2 + $0xc8] sm:$0xff]  ;;  %v937_v31 = vld [vmem:[%s1261_s2 + $0x80] sm:$0xff]  ;;  %v959_v43 = vld [vmem:[%s1265_s4 + $0x10] sm:$0xff] }
   0xd   :  { %396 = vmatpush.bf16.msra.mxu3 %v950_v11  ;;  %v945_v32 = vld [vmem:[%s1261_s2 + $0xc0] sm:$0xff]  ;;  %v954_v39 = vld [vmem:[%s1261_s2 + $0x108] sm:$0xff]  ;;  %v964_v46 = vld [vmem:[%s1266_s6 + $0x18] sm:$0xff] }
   0xe   :  { %358 = vmatpush.bf16.msra.mxu0 %v925_v12  ;;  %v953_v40 = vld [vmem:[%s1261_s2 + $0x100] sm:$0xff]  ;;  %v958_v44 = vld [vmem:[%s1265_s4 + $0x8] sm:$0xff]  ;;  %v963_v47 = vld [vmem:[%s1266_s6 + $0x10] sm:$0xff] }
   0xf   :  { %371 = vmatpush.bf16.msra.mxu1 %v933_v13  ;;  %v127_v34 = vld [vmem:[#allocation1] sm:$0xff]  ;;  %v128_v35 = vld [vmem:[#allocation1 + $0x9] sm:$0xff]  ;;  %v129_v36 = vld [vmem:[#allocation1 + $0x12] sm:$0xff] }
  0x10   :  { %384 = vmatpush.bf16.msra.mxu2 %v941_v15  ;;  %v130_v37 = vld [vmem:[#allocation1 + $0x1b] sm:$0xff]  ;;  %v131_v41 = vld [vmem:[#allocation1 + $0x24] sm:$0xff]  ;;  %v967_v5 = vld [vmem:[%s1268_s8 + $0x10] sm:$0xff] }
  0x11   :  { %397 = vmatpush.bf16.msra.mxu3 %v949_v16  ;;  %v957_v45 = vld [vmem:[%s1265_s4] sm:$0xff]  ;;  %v962_v48 = vld [vmem:[%s1266_s6 + $0x8] sm:$0xff]  ;;  %v968_v4 = vld [vmem:[%s1268_s8 + $0x18] sm:$0xff] }
  0x12   :  { %359 = vmatpush.bf16.msra.mxu0 %v924_v17  ;;  %v977_v51 = vld [vmem:[%s1263_s3] ss:$0 sm:$0xff]  ;;  %v966_v6 = vld [vmem:[%s1268_s8 + $0x8] sm:$0xff]  ;;  %v976_v14 = vld [vmem:[%s1270_s10 + $0x38] sm:$0xff] }
  0x13   :  { %372 = vmatpush.bf16.msra.mxu1 %v932_v18  ;;  %v961_v3 = vld [vmem:[%s1266_s6] sm:$0xff]  ;;  %v975_v15 = vld [vmem:[%s1270_s10 + $0x30] sm:$0xff]  ;;  %v974_v16 = vld [vmem:[%s1270_s10 + $0x28] sm:$0xff] }
  0x14   :  { %385 = vmatpush.bf16.msra.mxu2 %v940_v19  ;;  %v978_v7 = vld [vmem:[%s1264_s5] ss:$0 sm:$0xff]  ;;  %v972_v18 = vld [vmem:[%s1270_s10 + $0x18] sm:$0xff]  ;;  %v971_v19 = vld [vmem:[%s1270_s10 + $0x10] sm:$0xff] }
  0x15   :  { %398 = vmatpush.bf16.msra.mxu3 %v948_v20  ;;  %v965_v13 = vld [vmem:[%s1268_s8] sm:$0xff] }
  0x16   :  { %360 = vmatpush.bf16.msra.mxu0 %v923_v21  ;;  %v973_v17 = vld [vmem:[%s1270_s10 + $0x20] sm:$0xff] }
  0x17   :  { %373 = vmatpush.bf16.msra.mxu1 %v931_v22  ;;  %v979_v20 = vld [vmem:[%s1267_s7] ss:$0 sm:$0xff] }
  0x18   :  { %386 = vmatpush.bf16.msra.mxu2 %v939_v23 }
  0x19   :  { %399 = vmatpush.bf16.msra.mxu3 %v947_v24 }
  0x1a   :  { %361 = vmatpush.bf16.msra.mxu0 %v922_v25 }
  0x1b   :  { %374 = vmatpush.bf16.msra.mxu1 %v930_v26  ;;  %v970_v26 = vld [vmem:[%s1270_s10 + $0x8] sm:$0xff] }
  0x1c   :  { %387 = vmatpush.bf16.msra.mxu2 %v938_v27  ;;  %v969_v27 = vld [vmem:[%s1270_s10] sm:$0xff] }
  0x1d   :  { %400 = vmatpush.bf16.msra.mxu3 %v946_v28  ;;  %v665_v28 = vld [vmem:[%s1274_s1] sm:$0x3] }
  0x1e   :  { %362 = vmatpush.bf16.msra.mxu0 %v921_v29  ;;  %v673_v29 = vmul.f32 %v665_v28, %v665_v28 }
  0x1f   :  { %375 = vmatpush.bf16.msra.mxu1 %v929_v30  ;;  %v981_v30 = vld [vmem:[%s1271_s13] ss:$0 sm:$0xff] }
  0x20   :  { %388 = vmatpush.bf16.msra.mxu2 %v937_v31  ;;  %v674_v31 = vmul.f32 0.5, %v673_v29 }
  0x21   :  { %401 = vmatpush.bf16.msra.mxu3 %v945_v32  ;;  %363 = vmatmul.bf16.vlgmr.msra.gmra.mxu0 %v127_v34  ;;  %v980_v34 = vld [vmem:[%s1269_s9] ss:$0 sm:$0xff] }
  0x22   :  { %376 = vmatmul.bf16.vlgmr.msra.gmra.mxu1 %v128_v35  ;;  %652 = vmatpush.bf16.msrb.mxu0 %v976_v14  ;;  %v678_v32 = vsub.f32 %v981_v30, %v674_v31 }
  0x23   :  { %411 = vmatpush.bf16.msrb.mxu1 %v956_v33  ;;  %389 = vmatmul.bf16.vlgmr.msra.gmra.mxu2 %v129_v36 }
  0x24   :  { %402 = vmatmul.bf16.vlgmr.msra.gmra.mxu3 %v130_v37  ;;  %519 = vmatpush.bf16.msrb.mxu2 %v964_v46  ;;  %v680_v33 = vsel %vm679_vm1, %v678_v32, 0.0 }
  0x25   :  { %573 = vmatpush.bf16.msrb.mxu3 %v968_v4  ;;  %681 = vadd.xlane.f32.xlu0 %v680_v33 }
  0x26   :  { %653 = vmatpush.bf16.msrb.mxu0 %v975_v15 }
  0x27   :  { %412 = vmatpush.bf16.msrb.mxu1 %v955_v38 }
  0x28   :  { %520 = vmatpush.bf16.msrb.mxu2 %v963_v47 }
  0x29   :  { %574 = vmatpush.bf16.msrb.mxu3 %v967_v5 }
  0x2a   :  { %654 = vmatpush.bf16.msrb.mxu0 %v974_v16 }
  0x2b   :  { %413 = vmatpush.bf16.msrb.mxu1 %v954_v39 }
  0x2c   :  { %521 = vmatpush.bf16.msrb.mxu2 %v962_v48 }
  0x2d   :  { %575 = vmatpush.bf16.msrb.mxu3 %v966_v6 }
  0x2e   :  { %655 = vmatpush.bf16.msrb.mxu0 %v973_v17 }
  0x2f   :  { %414 = vmatpush.bf16.msrb.mxu1 %v953_v40  ;;  %v683_v40 = vlaneseq }
  0x30   :  { %522 = vmatpush.bf16.msrb.mxu2 %v961_v3 }
  0x31   :  { %576 = vmatpush.bf16.msrb.mxu3 %v965_v13 }
  0x32   :  { %837 = vmatmul.msk.bf16.vlgmr.msrb.gmra.mxu1 %vm352_vm0, %v131_v41  ;;  %656 = vmatpush.bf16.msrb.mxu0 %v972_v18  ;;  %v983_v41 = vld [vmem:[%s1273_s12] ss:$0 sm:$0xff] }
  0x33   :  { %465 = vmatpush.bf16.msra.mxu1 %v960_v42  ;;  %v684_v42 = vand.u32 127, %v683_v40 }
  0x35   :  { %vm685_vm2 = vcmp.eq.s32.totalorder %v684_v42, 4 }
  0x36   :  { %657 = vmatpush.bf16.msrb.mxu0 %v971_v19 }
  0x37   :  { %466 = vmatpush.bf16.msra.mxu1 %v959_v43  ;;  %v982_v43 = vld [vmem:[%s1272_s11] ss:$0 sm:$0xff] }
  0x3a   :  { %658 = vmatpush.bf16.msrb.mxu0 %v970_v26 }
  0x3b   :  { %467 = vmatpush.bf16.msra.mxu1 %v958_v44  ;;  %v670_v44 = vmul.f32 %v983_v41, %v665_v28 }
  0x3e   :  { %659 = vmatpush.bf16.msrb.mxu0 %v969_v27 }
  0x3f   :  { %468 = vmatpush.bf16.msra.mxu1 %v957_v45 }
  0x98   :  { %v682_v45 = vpop.xlane.xlu0 %681 }
  0x99   :  { %v686_v48 = vsel %vm685_vm2, %v682_v45, 0.0 }
  0x9e   :  { %v364_v49 = vpop.f32.mrf.mxu0 }
  0x9f   :  { %v377_v50 = vpop.f32.mrf.mxu1  ;;  %v365_v52 = vadd.f32 %v977_v51, %v364_v49 }
  0xa1   :  { %v378_v57 = vadd.f32 %v377_v50, %v365_v52 }
  0xa6   :  { %v390_v53 = vpop.f32.mrf.mxu2  ;;  %v366_v55 = vpop.f32.mrf.mxu0 }
  0xa7   :  { %v403_v54 = vpop.f32.mrf.mxu3  ;;  %v379_v56 = vpop.f32.mrf.mxu1  ;;  %v391_v58 = vadd.f32 %v390_v53, %v378_v57 }
  0xa9   :  { %v404_v59 = vadd.f32 %v403_v54, %v391_v58 }
  0xae   :  { %v392_v60 = vpop.f32.mrf.mxu2 }
  0xaf   :  { %v405_v61 = vpop.f32.mrf.mxu3  ;;  %v416_v62 = vpop.f32.mrf.mxu1 }
  0xb0   :  { %v417_v63 = vadd.f32 %v416_v62, %v404_v59 }
  0xb2   :  { %v420_v0 = vmax.f32 %v417_v63, 0.0 }
  0xb4   :  { %v421_v1 = vpack.c.bf16 %v420_v0, %v420_v0 }
  0xb6   :  { %854 = vmatmul.msk.bf16.vlgmr.msra.gmra.mxu1 %vm352_vm0, %v421_v1 }
  0xb7   :  { %v418_v2 = vpop.f32.mrf.mxu1 }
 0x133   :  { %v470_v8 = vpop.f32.mrf.mxu1 }
 0x134   :  { %v471_v9 = vadd.f32 %v978_v7, %v470_v8 }
 0x136   :  { %v474_v10 = vmax.f32 %v471_v9, 0.0 }
 0x138   :  { %v475_v11 = vpack.c.bf16 %v474_v10, %v474_v10 }
 0x13a   :  { %871 = vmatmul.msk.bf16.vlgmr.msrb.gmra.mxu2 %vm352_vm0, %v475_v11 }
 0x13b   :  { %v472_v12 = vpop.f32.mrf.mxu1 }
 0x1bd   :  { %v524_v21 = vpop.f32.mrf.mxu2 }
 0x1be   :  { %v525_v22 = vadd.f32 %v979_v20, %v524_v21 }
 0x1c0   :  { %v528_v23 = vmax.f32 %v525_v22, 0.0 }
 0x1c2   :  { %v529_v24 = vpack.c.bf16 %v528_v23, %v528_v23 }
 0x1c4   :  { %888 = vmatmul.msk.bf16.vlgmr.msrb.gmra.mxu3 %vm352_vm0, %v529_v24 }
 0x1c5   :  { %v526_v25 = vpop.f32.mrf.mxu2 }
 0x247   :  { %v578_v35 = vpop.f32.mrf.mxu3 }
 0x248   :  { %v579_v36 = vadd.f32 %v980_v34, %v578_v35 }
 0x24a   :  { %v582_v37 = vmax.f32 %v579_v36, 0.0 }
 0x24c   :  { %v583_v38 = vpack.c.bf16 %v582_v37, %v582_v37 }
 0x24e   :  { %660 = vmatmul.bf16.vlgmr.msrb.gmra.mxu0 %v583_v38 }
 0x24f   :  { %v580_v39 = vpop.f32.mrf.mxu3 }
 0x2cb   :  { %v661_v46 = vpop.f32.mrf.mxu0 }
 0x2cc   :  { %v662_v47 = vadd.f32 %v982_v43, %v661_v46 }
 0x2ce   :  { %v671_v49 = vadd.f32 %v670_v44, %v662_v47 }
 0x2d0   :  { %v687_v50 = vadd.f32 %v686_v48, %v671_v49 }
 0x2d2   :  { %688 = vst [vmem:[%s1275_s14] sm:$0x3] %v687_v50 }
 0x2d3   :  { %v663_v51 = vpop.f32.mrf.mxu0 }

</bundles_post_ra>
